<compile_context>
chip_gen: v7x
topology: tpu7x:2x2x1
jax: 0.10.0
libtpu: 0.0.40
codegen_flags: <defaults>
</compile_context>

<pallas_src>
import functools

import jax
import jax.numpy as jnp
from jax.experimental import pallas as pl
from jax.experimental.pallas import tpu as pltpu


def _round_up(v, m):
    return (v + m - 1) // m * m


def _pick_tile(n_pad, candidates):
    for c in candidates:
        if c <= n_pad and n_pad % c == 0:
            return c
    return n_pad


def _fused_gcn_kernel(adj_ref, x_ref, w_ref, o_ref, acc_ref, *, single_k_step):
    """out[i, j] = relu( sum_k adj[i, k] @ (x[k, :] @ W[:, j]) )."""
    # h_tile = x[k_tile] @ W  -- recomputed per row tile i; the extra FLOPs are
    # ~f_in/tm of the adj matmul and free in the HBM-bound regime.
    h = jnp.dot(x_ref[...], w_ref[...], preferred_element_type=jnp.float32)
    part = jnp.dot(adj_ref[...], h.astype(adj_ref.dtype),
                   preferred_element_type=jnp.float32)

    if single_k_step:
        # K grid has length 1: skip zero-init / accumulator round-trip.
        o_ref[...] = jnp.maximum(part, 0.0).astype(o_ref.dtype)
    else:
        @pl.when(pl.program_id(2) == 0)
        def _():
            acc_ref[...] = jnp.zeros_like(acc_ref)

        acc_ref[...] += part

        @pl.when(pl.program_id(2) == pl.num_programs(2) - 1)
        def _():
            o_ref[...] = jnp.maximum(acc_ref[...], 0.0).astype(o_ref.dtype)


def graph_conv_sparse(x, adj, weight):
    """GraphConvSparse.forward: relu(adj @ (x @ weight)). adj here is dense."""
    n, f_in = x.shape
    assert weight.shape[0] == f_in
    f_out = weight.shape[1]
    assert adj.shape == (n, n)

    # Pad to MXU/lane-friendly sizes (zero padding does not change results).
    n_pad = _round_up(n, 128)
    fi_pad = _round_up(f_in, 128)
    fo_pad = _round_up(f_out, 128)

    adj_b = jnp.pad(adj.astype(jnp.bfloat16), ((0, n_pad - n), (0, n_pad - n)))
    x_b = jnp.pad(x.astype(jnp.bfloat16), ((0, n_pad - n), (0, fi_pad - f_in)))
    w_b = jnp.pad(weight.astype(jnp.bfloat16),
                  ((0, fi_pad - f_in), (0, fo_pad - f_out)))

    # Row tile of adj/out; K tile over the node (contraction) axis.
    tm = _pick_tile(n_pad, (256, 128))
    tk = _pick_tile(n_pad, (512, 384, 256, 128))
    tn = 128  # lane-dense output tile

    grid = (n_pad // tm, fo_pad // tn, n_pad // tk)
    single_k_step = grid[2] == 1

    out = pl.pallas_call(
        functools.partial(_fused_gcn_kernel, single_k_step=single_k_step),
        out_shape=jax.ShapeDtypeStruct((n_pad, fo_pad), jnp.float32),
        grid_spec=pltpu.PrefetchScalarGridSpec(
            num_scalar_prefetch=0,
            grid=grid,
            in_specs=[
                pl.BlockSpec((tm, tk), lambda i, j, k: (i, k)),      # adj tile
                pl.BlockSpec((tk, fi_pad), lambda i, j, k: (k, 0)),  # x rows
                pl.BlockSpec((fi_pad, tn), lambda i, j, k: (0, j)),  # W (VMEM-resident)
            ],
            out_specs=pl.BlockSpec((tm, tn), lambda i, j, k: (i, j)),
            scratch_shapes=[pltpu.VMEM((tm, tn), jnp.float32)],
        ),
        compiler_params=pltpu.CompilerParams(
            dimension_semantics=("parallel", "parallel", "arbitrary"),
            vmem_limit_bytes=32 * 1024 * 1024,
        ),
    )(adj_b, x_b, w_b)

    return out[:n, :f_out]


def glorot_init(key, input_dim, output_dim):
    init_range = jnp.sqrt(6.0 / (input_dim + output_dim))
    return jax.random.uniform(key, (input_dim, output_dim), jnp.float32,
                              minval=-init_range, maxval=init_range)


if __name__ == "__main__":
    key = jax.random.PRNGKey(0)
    k_w, k_x, k_a = jax.random.split(key, 3)

    N = 128          # number of graph nodes
    input_dim = 64   # input feature dim
    output_dim = 32  # output feature dim

    # Deterministic glorot-style weight (same shape semantics as torch module).
    weight = glorot_init(k_w, input_dim, output_dim)

    # Node features.
    x = jax.random.normal(k_x, (N, input_dim), dtype=jnp.float32)

    # Synthetic symmetric, row-normalized adjacency (dense stand-in for the
    # sparse adj the module stores).
    # TODO(synk): true torch.sparse adj has no clean Pallas equivalent; dense matmul used.
    a = (jax.random.uniform(k_a, (N, N)) < 0.1).astype(jnp.float32)
    a = jnp.maximum(a, a.T) + jnp.eye(N, dtype=jnp.float32)
    adj = a / jnp.sum(a, axis=1, keepdims=True)

    out = jax.block_until_ready(graph_conv_sparse(x, adj, weight))
    assert out.shape == (N, output_dim)

    # Tight check against a reference that uses the same bf16-in / f32-acc
    # numerics as the kernel.
    h_ref = jnp.dot(x.astype(jnp.bfloat16), weight.astype(jnp.bfloat16),
                    preferred_element_type=jnp.float32)
    ref_bf16 = jnp.maximum(
        jnp.dot(adj.astype(jnp.bfloat16), h_ref.astype(jnp.bfloat16),
                preferred_element_type=jnp.float32), 0.0)
    assert jnp.allclose(out, ref_bf16, atol=2e-3, rtol=2e-3), \
        float(jnp.max(jnp.abs(out - ref_bf16)))

    # Loose check against the pure-f32 module semantics.
    ref_f32 = jnp.maximum(adj @ (x @ weight), 0.0)
    assert jnp.allclose(out, ref_f32, atol=5e-2, rtol=5e-2), \
        float(jnp.max(jnp.abs(out - ref_f32)))

    print("KERNEL_OK")
</pallas_src>

<mosaic_0001>
module attributes {stable_mosaic.version = 11 : i64} {
  func.func @_fused_gcn_kernel(%arg0: i32, %arg1: i32, %arg2: i32, %arg3: memref<128x128xbf16, #tpu.memory_space<vmem>>, %arg4: memref<128x128xbf16, #tpu.memory_space<vmem>>, %arg5: memref<128x128xbf16, #tpu.memory_space<vmem>>, %arg6: memref<128x128xf32, #tpu.memory_space<vmem>>, %arg7: memref<128x128xf32, #tpu.memory_space<vmem>>) attributes {dimension_semantics = [#tpu.dimension_semantics<parallel>, #tpu.dimension_semantics<parallel>, #tpu.dimension_semantics<arbitrary>], iteration_bounds = array<i64: 1, 1, 1>, scalar_prefetch = 0 : i64, scratch_operands = 1 : i64, tpu.core_type = #tpu.core_type<tc>, window_params = [{transform_indices = @transform_0, window_bounds = array<i64: 128, 128>}, {transform_indices = @transform_1, window_bounds = array<i64: 128, 128>}, {transform_indices = @transform_2, window_bounds = array<i64: 128, 128>}, {transform_indices = @transform_3, window_bounds = array<i64: 128, 128>}]} {
    %c0 = arith.constant 0 : index
    %c0_0 = arith.constant 0 : index
    %0 = vector.load %arg4[%c0, %c0_0] : memref<128x128xbf16, #tpu.memory_space<vmem>>, vector<128x128xbf16>
    %c0_1 = arith.constant 0 : index
    %c0_2 = arith.constant 0 : index
    %1 = vector.load %arg5[%c0_1, %c0_2] : memref<128x128xbf16, #tpu.memory_space<vmem>>, vector<128x128xbf16>
    %cst = arith.constant dense<0.000000e+00> : vector<128x128xf32>
    %2 = tpu.matmul %0, %1, %cst {dimension_numbers = #tpu.dot_dimension_numbers<[1], [0], [0], [1], [0, 0, 1, 1], [], []>} : vector<128x128xbf16>, vector<128x128xbf16>, vector<128x128xf32> -> vector<128x128xf32>
    %c0_3 = arith.constant 0 : index
    %c0_4 = arith.constant 0 : index
    %3 = vector.load %arg3[%c0_3, %c0_4] : memref<128x128xbf16, #tpu.memory_space<vmem>>, vector<128x128xbf16>
    %4 = arith.truncf %2 : vector<128x128xf32> to vector<128x128xbf16>
    %cst_5 = arith.constant dense<0.000000e+00> : vector<128x128xf32>
    %5 = tpu.matmul %3, %4, %cst_5 {dimension_numbers = #tpu.dot_dimension_numbers<[1], [0], [0], [1], [0, 0, 1, 1], [], []>} : vector<128x128xbf16>, vector<128x128xbf16>, vector<128x128xf32> -> vector<128x128xf32>
    %cst_6 = arith.constant 0.000000e+00 : f32
    %6 = vector.broadcast %cst_6 : f32 to vector<128x128xf32>
    %7 = arith.maximumf %5, %6 : vector<128x128xf32>
    %c0_7 = arith.constant 0 : index
    %c0_8 = arith.constant 0 : index
    %8 = vector.load %arg6[%c0_7, %c0_8] : memref<128x128xf32, #tpu.memory_space<vmem>>, vector<128x128xf32>
    tpu.vector_store %arg6[%c0_7, %c0_8], %7 {strides = array<i32>} : memref<128x128xf32, #tpu.memory_space<vmem>>, vector<128x128xf32>,
    return
  }
  func.func @transform_0(%arg0: i32, %arg1: i32, %arg2: i32) -> (i32, i32) {
    %c0_i32 = arith.constant 0 : i32
    return %arg0, %arg2 : i32, i32
  }
  func.func @transform_1(%arg0: i32, %arg1: i32, %arg2: i32) -> (i32, i32) {
    %c0_i32 = arith.constant 0 : i32
    %c0_i32_0 = arith.constant 0 : i32
    return %arg2, %c0_i32 : i32, i32
  }
  func.func @transform_2(%arg0: i32, %arg1: i32, %arg2: i32) -> (i32, i32) {
    %c0_i32 = arith.constant 0 : i32
    %c0_i32_0 = arith.constant 0 : i32
    return %c0_i32, %arg1 : i32, i32
  }
  func.func @transform_3(%arg0: i32, %arg1: i32, %arg2: i32) -> (i32, i32) {
    %c0_i32 = arith.constant 0 : i32
    return %arg0, %arg1 : i32, i32
  }
}

</mosaic_0001>

<bundles_post_ra>
// kernel: tpu_custom_call.1
= control target key start
LH: loop header
LB: loop body
LE: loop exit
PB: predicated region body
PF: predicated region fallthrough
CT: control target
= control target key end

     0   :  { %8 = vsyncpa [#allocation4], 0  ;;  %s839_s0 = inlined_call_operand.hbm [shape: bf16[128,128], index: 0, kind: input, shape index: {}]   ;;  %s840_s1 = inlined_call_operand.hbm [shape: bf16[128,128], index: 1, kind: input, shape index: {}]   ;;  %s841_s2 = inlined_call_operand.hbm [shape: bf16[128,128], index: 2, kind: input, shape index: {}]   ;;  %s842_s3 = inlined_call_operand.hbm [shape: f32[128,128], index: 3, kind: output, shape index: {}]  }
   0x1   :  { %9 = vsyncpa [#allocation7], 0 }
   0x2   :  { %10 = vsyncpa [#allocation5], 0  ;;  %s747_s12 = smov [#allocation6]   ;;  %s748_s14 = smov [#allocation3]  }
   0x3   :  { %s28_s13 = sshll.u32 %s747_s12, 4  ;;  %s16_s15 = sshll.u32 %s748_s14, 4  ;;  %s29_s13 = int_to_ptr.vmem [resolvable:$true] %s28_s13  ;;  %s775_s15 = int_to_ptr.vmem [resolvable:$true] %s16_s15 }
   0x4   :  { %s653_s18 = scalar_lea.hbm %s840_s1, 1024 }
   0x5   :  { %p654_p0 = scmp.ne.s32.totalorder %s840_s1, %s653_s18  ;;  %p657_p1 = scmp.lt.u32.totalorder %s653_s18, %s840_s1 }
   0x7   :  { %p659_p2 = pnand %p657_p1, %p654_p0 }
   0x9   :  { %662 = shalt.err (!%p659_p2)
}
   0xa   :  { %s663_s23 = scalar_lea.vmem %s29_s13, 1024  ;;  %p668_p4 = scmp.lt.s32.totalorder %s29_s13, %s29_s13 }
   0xb   :  { %p664_p3 = scmp.ne.s32.totalorder %s29_s13, %s663_s23  ;;  %p669_p5 = scmp.lt.s32.totalorder %s663_s23, %s663_s23 }
   0xd   :  { %p670_p6 = por %p669_p5, %p668_p4 }
   0xf   :  { %p671_p7 = pnand %p670_p6, %p664_p3 }
  0x11   :  { %674 = shalt.err (!%p671_p7)
}
  0x12   :  { %s749_s24 = smov 64   ;;  %s750_s25 = smov 4  }
  0x13   :  { %34 = dma.hbm_to_vmem [thread:$0]  %s840_s1, 1024, %s29_s13, [#allocation7], %s749_s24, %s749_s24, %s750_s25  }
  0x14   :  { %s675_s30 = scalar_lea.hbm %s839_s0, 1024 }
  0x15   :  { %p676_p8 = scmp.ne.s32.totalorder %s839_s0, %s675_s30  ;;  %p679_p9 = scmp.lt.u32.totalorder %s675_s30, %s839_s0 }
  0x17   :  { %p681_p10 = pnand %p679_p9, %p676_p8 }
  0x19   :  { %684 = shalt.err (!%p681_p10)
}
  0x1a   :  { %s685_s8 = scalar_lea.vmem %s775_s15, 1024  ;;  %p690_p12 = scmp.lt.s32.totalorder %s775_s15, %s775_s15 }
  0x1b   :  { %p686_p11 = scmp.ne.s32.totalorder %s775_s15, %s685_s8  ;;  %p691_p13 = scmp.lt.s32.totalorder %s685_s8, %s685_s8 }
  0x1d   :  { %p692_p0 = por %p691_p13, %p690_p12 }
  0x1f   :  { %p693_p1 = pnand %p692_p0, %p686_p11 }
  0x21   :  { %696 = shalt.err (!%p693_p1)
}
  0x22   :  { %22 = dma.hbm_to_vmem [thread:$0]  %s839_s0, 1024, %s775_s15, [#allocation4], %s749_s24, %s749_s24, %s750_s25  }
  0x23   :  { %s751_s10 = smov [#allocation8]   ;;  %s697_s14 = scalar_lea.hbm %s841_s2, 1024 }
  0x24   :  { %s40_s11 = sshll.u32 %s751_s10, 4  ;;  %p698_p2 = scmp.ne.s32.totalorder %s841_s2, %s697_s14  ;;  %s41_s11 = int_to_ptr.vmem [resolvable:$true] %s40_s11 }
  0x25   :  { %p701_p3 = scmp.lt.u32.totalorder %s697_s14, %s841_s2 }
  0x27   :  { %p703_p4 = pnand %p701_p3, %p698_p2 }
  0x29   :  { %706 = shalt.err (!%p703_p4)
}
  0x2a   :  { %s707_s20 = scalar_lea.vmem %s41_s11, 1024  ;;  %p712_p6 = scmp.lt.s32.totalorder %s41_s11, %s41_s11 }
  0x2b   :  { %p708_p5 = scmp.ne.s32.totalorder %s41_s11, %s707_s20  ;;  %p713_p7 = scmp.lt.s32.totalorder %s707_s20, %s707_s20 }
  0x2d   :  { %p714_p8 = por %p713_p7, %p712_p6 }
  0x2f   :  { %p715_p9 = pnand %p714_p8, %p708_p5 }
  0x31   :  { %718 = shalt.err (!%p715_p9)
}
  0x32   :  { %46 = dma.hbm_to_vmem [thread:$0]  %s841_s2, 1024, %s41_s11, [#allocation7], %s749_s24, %s749_s24, %s750_s25  }
  0x33   :  { %741 = dma.done.wait [#allocation4], 1024  }
  0x34   :  { %742 = vsyncadd [#allocation4], 4294966272 }
  0x35   :  { %743 = dma.done.wait [#allocation7], 2048  }
  0x36   :  { %744 = vsyncadd [#allocation7], 4294965248  ;;  %v629_v0 = vld [vmem:[#allocation8] sm:$0xff]   ;;  %v630_v1 = vld [vmem:[#allocation8 + $0x8] sm:$0xff]   ;;  %s752_s2 = smov [#allocation9]  }
  0x37   :  { %557 = vmatprep.subr.bf16.mxu0 %v629_v0  ;;  %v631_v2 = vld [vmem:[#allocation8 + $0x10] sm:$0xff]   ;;  %v632_v3 = vld [vmem:[#allocation8 + $0x18] sm:$0xff]   ;;  %v637_v4 = vld [vmem:[#allocation6] sm:$0xff]   ;;  %s488_s21 = sshll.u32 %s752_s2, 4  ;;  %s489_s21 = int_to_ptr.vmem [resolvable:$true] %s488_s21 }
  0x38   :  { %558 = vmatpush3.bf16.msra.mxu0 %v629_v0  ;;  %573 = vmatprep.mubr.bf16.mxu0 %v637_v4  ;;  %v633_v5 = vld [vmem:[#allocation8 + $0x20] sm:$0xff]   ;;  %v634_v6 = vld [vmem:[#allocation8 + $0x28] sm:$0xff]   ;;  %v635_v7 = vld [vmem:[#allocation8 + $0x30] sm:$0xff]   ;;  %s719_s22 = scalar_lea.vmem %s489_s21, 2048  ;;  %p724_p11 = scmp.lt.s32.totalorder %s489_s21, %s489_s21 }
  0x39   :  { %559 = vmatprep.subr.bf16.mxu0 %v630_v1  ;;  %v636_v8 = vld [vmem:[#allocation8 + $0x38] sm:$0xff]   ;;  %v638_v9 = vld [vmem:[#allocation6 + $0x8] sm:$0xff]   ;;  %v639_v10 = vld [vmem:[#allocation6 + $0x10] sm:$0xff]   ;;  %p720_p10 = scmp.ne.s32.totalorder %s489_s21, %s719_s22  ;;  %p725_p12 = scmp.lt.s32.totalorder %s719_s22, %s719_s22 }
  0x3a   :  { %v640_v11 = vld [vmem:[#allocation6 + $0x18] sm:$0xff]   ;;  %v641_v12 = vld [vmem:[#allocation6 + $0x20] sm:$0xff]   ;;  %v642_v13 = vld [vmem:[#allocation6 + $0x28] sm:$0xff]  }
  0x3b   :  { %v643_v14 = vld [vmem:[#allocation6 + $0x30] sm:$0xff]   ;;  %v644_v15 = vld [vmem:[#allocation6 + $0x38] sm:$0xff]   ;;  %v645_v16 = vld [vmem:[#allocation3] sm:$0xff]   ;;  %p726_p13 = por %p725_p12, %p724_p11 }
  0x3c   :  { %560 = vmatpush3.bf16.msra.mxu0 %v630_v1  ;;  %605 = vmatprep.mubr.bf16.mxu1 %v645_v16  ;;  %v646_v41 = vld [vmem:[#allocation3 + $0x8] sm:$0xff]   ;;  %v647_v42 = vld [vmem:[#allocation3 + $0x10] sm:$0xff]   ;;  %v648_v43 = vld [vmem:[#allocation3 + $0x18] sm:$0xff]  }
  0x3d   :  { %561 = vmatprep.subr.bf16.mxu0 %v631_v2  ;;  %v649_v44 = vld [vmem:[#allocation3 + $0x20] sm:$0xff]   ;;  %v650_v45 = vld [vmem:[#allocation3 + $0x28] sm:$0xff]   ;;  %v651_v46 = vld [vmem:[#allocation3 + $0x30] sm:$0xff]   ;;  %p727_p0 = pnand %p726_p13, %p720_p10 }
  0x3e   :  { %v652_v47 = vld [vmem:[#allocation3 + $0x38] sm:$0xff]  }
  0x40   :  { %562 = vmatpush3.bf16.msra.mxu0 %v631_v2 }
  0x41   :  { %563 = vmatprep.subr.bf16.mxu0 %v632_v3 }
  0x44   :  { %564 = vmatpush3.bf16.msra.mxu0 %v632_v3 }
  0x45   :  { %565 = vmatprep.subr.bf16.mxu0 %v633_v5 }
  0x48   :  { %566 = vmatpush3.bf16.msra.mxu0 %v633_v5 }
  0x49   :  { %567 = vmatprep.subr.bf16.mxu0 %v634_v6 }
  0x4c   :  { %568 = vmatpush3.bf16.msra.mxu0 %v634_v6 }
  0x4d   :  { %569 = vmatprep.subr.bf16.mxu0 %v635_v7 }
  0x50   :  { %570 = vmatpush3.bf16.msra.mxu0 %v635_v7 }
  0x51   :  { %571 = vmatprep.subr.bf16.mxu0 %v636_v8 }
  0x54   :  { %572 = vmatpush3.bf16.msra.mxu0 %v636_v8 }
  0x57   :  { %574 = vmatmul.mubr.bf16.vlgmr.msra.gmra.mrb[0].mxu0 %v638_v9 }
  0x58   :  { %577 = vmatprep.mubr.bf16.mxu0 %v639_v10 }
  0x5f   :  { %578 = vmatmul.mubr.bf16.gmra.mrb[4].mxu0 %v640_v11 }
  0x60   :  { %581 = vmatprep.mubr.bf16.mxu0 %v641_v12 }
  0x67   :  { %582 = vmatmul.mubr.bf16.gmra.mrb[8].mxu0 %v642_v13 }
  0x68   :  { %585 = vmatprep.mubr.bf16.mxu0 %v643_v14 }
  0x6f   :  { %586 = vmatmul.mubr.bf16.gmra.mrb[12].mxu0 %v644_v15 }
 0x12a   :  { %v575_v17 = vpop.f32.mrb[0].mxu0 }
 0x12b   :  { %v219_v18 = vpop.f32.mrb[1].mxu0 }
 0x12c   :  { %v576_v19 = vpop.f32.mrb[2].mxu0 }
 0x12d   :  { %v299_v20 = vpack.c.bf16 %v576_v19, %v575_v17  ;;  %v222_v21 = vpop.f32.mrb[3].mxu0 }
 0x12e   :  { %v298_v22 = vpack.c.bf16 %v222_v21, %v219_v18 }
 0x130   :  { %589 = vmatprep.subr.bf16.mxu1 %v298_v22 }
 0x131   :  { %590 = vmatpush3.bf16.msra.mxu1 %v298_v22 }
 0x132   :  { %v579_v23 = vpop.f32.mrb[4].mxu0  ;;  %591 = vmatprep.subr.bf16.mxu1 %v299_v20 }
 0x133   :  { %v235_v24 = vpop.f32.mrb[5].mxu0 }
 0x134   :  { %v580_v25 = vpop.f32.mrb[6].mxu0 }
 0x135   :  { %v301_v26 = vpack.c.bf16 %v580_v25, %v579_v23  ;;  %v238_v27 = vpop.f32.mrb[7].mxu0  ;;  %592 = vmatpush3.bf16.msra.mxu1 %v299_v20 }
 0x136   :  { %v300_v28 = vpack.c.bf16 %v238_v27, %v235_v24 }
 0x138   :  { %593 = vmatprep.subr.bf16.mxu1 %v300_v28 }
 0x139   :  { %594 = vmatpush3.bf16.msra.mxu1 %v300_v28 }
 0x13a   :  { %v583_v29 = vpop.f32.mrb[8].mxu0  ;;  %595 = vmatprep.subr.bf16.mxu1 %v301_v26 }
 0x13b   :  { %v251_v30 = vpop.f32.mrb[9].mxu0 }
 0x13c   :  { %v584_v31 = vpop.f32.mrb[10].mxu0 }
 0x13d   :  { %v303_v32 = vpack.c.bf16 %v584_v31, %v583_v29  ;;  %v254_v33 = vpop.f32.mrb[11].mxu0  ;;  %596 = vmatpush3.bf16.msra.mxu1 %v301_v26 }
 0x13e   :  { %v302_v34 = vpack.c.bf16 %v254_v33, %v251_v30 }
 0x140   :  { %597 = vmatprep.subr.bf16.mxu1 %v302_v34 }
 0x141   :  { %598 = vmatpush3.bf16.msra.mxu1 %v302_v34 }
 0x142   :  { %v587_v35 = vpop.f32.mrb[12].mxu0  ;;  %599 = vmatprep.subr.bf16.mxu1 %v303_v32 }
 0x143   :  { %v267_v36 = vpop.f32.mrb[13].mxu0 }
 0x144   :  { %v588_v37 = vpop.f32.mrb[14].mxu0 }
 0x145   :  { %v305_v38 = vpack.c.bf16 %v588_v37, %v587_v35  ;;  %v270_v39 = vpop.f32.mrb[15].mxu0  ;;  %600 = vmatpush3.bf16.msra.mxu1 %v303_v32 }
 0x146   :  { %v304_v40 = vpack.c.bf16 %v270_v39, %v267_v36 }
 0x148   :  { %601 = vmatprep.subr.bf16.mxu1 %v304_v40 }
 0x149   :  { %602 = vmatpush3.bf16.msra.mxu1 %v304_v40 }
 0x14a   :  { %603 = vmatprep.subr.bf16.mxu1 %v305_v38 }
 0x14d   :  { %604 = vmatpush3.bf16.msra.mxu1 %v305_v38 }
 0x150   :  { %606 = vmatmul.mubr.bf16.vlgmr.msra.gmra.mrb[0].mxu1 %v646_v41 }
 0x151   :  { %609 = vmatprep.mubr.bf16.mxu1 %v647_v42 }
 0x158   :  { %610 = vmatmul.mubr.bf16.gmra.mrb[4].mxu1 %v648_v43 }
 0x159   :  { %613 = vmatprep.mubr.bf16.mxu1 %v649_v44 }
 0x160   :  { %614 = vmatmul.mubr.bf16.gmra.mrb[8].mxu1 %v650_v45 }
 0x161   :  { %617 = vmatprep.mubr.bf16.mxu1 %v651_v46 }
 0x168   :  { %618 = vmatmul.mubr.bf16.gmra.mrb[12].mxu1 %v652_v47 }
 0x223   :  { %v607_v48 = vpop.f32.mrb[0].mxu1 }
 0x224   :  { %v453_v49 = vmax.f32 %v607_v48, 0.0  ;;  %v388_v50 = vpop.f32.mrb[1].mxu1 }
 0x225   :  { %v451_v51 = vmax.f32 %v388_v50, 0.0  ;;  %v608_v52 = vpop.f32.mrb[2].mxu1 }
 0x226   :  { %469 = vst [vmem:[#allocation9 + $0x10] sm:$0xff] %v453_v49  ;;  %v454_v53 = vmax.f32 %v608_v52, 0.0  ;;  %v391_v54 = vpop.f32.mrb[3].mxu1 }
 0x227   :  { %467 = vst [vmem:[#allocation9] sm:$0xff] %v451_v51  ;;  %v452_v55 = vmax.f32 %v391_v54, 0.0 }
 0x228   :  { %470 = vst [vmem:[#allocation9 + $0x18] sm:$0xff] %v454_v53 }
 0x229   :  { %468 = vst [vmem:[#allocation9 + $0x8] sm:$0xff] %v452_v55 }
 0x22b   :  { %v611_v56 = vpop.f32.mrb[4].mxu1 }
 0x22c   :  { %v457_v57 = vmax.f32 %v611_v56, 0.0  ;;  %v404_v58 = vpop.f32.mrb[5].mxu1 }
 0x22d   :  { %v455_v59 = vmax.f32 %v404_v58, 0.0  ;;  %v612_v60 = vpop.f32.mrb[6].mxu1 }
 0x22e   :  { %473 = vst [vmem:[#allocation9 + $0x30] sm:$0xff] %v457_v57  ;;  %v458_v61 = vmax.f32 %v612_v60, 0.0  ;;  %v407_v62 = vpop.f32.mrb[7].mxu1 }
 0x22f   :  { %471 = vst [vmem:[#allocation9 + $0x20] sm:$0xff] %v455_v59  ;;  %v456_v63 = vmax.f32 %v407_v62, 0.0 }
 0x230   :  { %474 = vst [vmem:[#allocation9 + $0x38] sm:$0xff] %v458_v61 }
 0x231   :  { %472 = vst [vmem:[#allocation9 + $0x28] sm:$0xff] %v456_v63 }
 0x233   :  { %v615_v0 = vpop.f32.mrb[8].mxu1 }
 0x234   :  { %v461_v1 = vmax.f32 %v615_v0, 0.0  ;;  %v420_v2 = vpop.f32.mrb[9].mxu1 }
 0x235   :  { %v459_v3 = vmax.f32 %v420_v2, 0.0  ;;  %v616_v4 = vpop.f32.mrb[10].mxu1 }
 0x236   :  { %477 = vst [vmem:[#allocation9 + $0x50] sm:$0xff] %v461_v1  ;;  %v462_v5 = vmax.f32 %v616_v4, 0.0  ;;  %v423_v6 = vpop.f32.mrb[11].mxu1 }
 0x237   :  { %475 = vst [vmem:[#allocation9 + $0x40] sm:$0xff] %v459_v3  ;;  %v460_v7 = vmax.f32 %v423_v6, 0.0 }
 0x238   :  { %478 = vst [vmem:[#allocation9 + $0x58] sm:$0xff] %v462_v5 }
 0x239   :  { %476 = vst [vmem:[#allocation9 + $0x48] sm:$0xff] %v460_v7 }
 0x23b   :  { %v619_v8 = vpop.f32.mrb[12].mxu1 }
 0x23c   :  { %v465_v9 = vmax.f32 %v619_v8, 0.0  ;;  %v436_v10 = vpop.f32.mrb[13].mxu1 }
 0x23d   :  { %v463_v11 = vmax.f32 %v436_v10, 0.0  ;;  %v620_v12 = vpop.f32.mrb[14].mxu1 }
 0x23e   :  { %481 = vst [vmem:[#allocation9 + $0x70] sm:$0xff] %v465_v9  ;;  %v466_v13 = vmax.f32 %v620_v12, 0.0  ;;  %v439_v14 = vpop.f32.mrb[15].mxu1 }
 0x23f   :  { %479 = vst [vmem:[#allocation9 + $0x60] sm:$0xff] %v463_v11  ;;  %v464_v15 = vmax.f32 %v439_v14, 0.0 }
 0x240   :  { %482 = vst [vmem:[#allocation9 + $0x78] sm:$0xff] %v466_v13 }
 0x241   :  { %480 = vst [vmem:[#allocation9 + $0x68] sm:$0xff] %v464_v15 }
 0x242   :  { %730 = shalt.err (!%p727_p0)
}
 0x243   :  { %s731_s25 = scalar_lea.hbm %s842_s3, 2048 }
 0x244   :  { %p732_p1 = scmp.ne.s32.totalorder %s842_s3, %s731_s25  ;;  %p735_p2 = scmp.lt.u32.totalorder %s731_s25, %s842_s3 }
 0x246   :  { %p737_p3 = pnand %p735_p2, %p732_p1 }
 0x248   :  { %740 = shalt.err (!%p737_p3)
}
 0x249   :  { %s753_s30 = smov 128   ;;  %s754_s4 = smov 8  }
 0x24a   :  { %494 = dma.vmem_to_hbm [thread:$0]  %s489_s21, 2048, %s842_s3, [#allocation5], %s753_s30, %s753_s30, %s754_s4  }
 0x24b   :  { %745 = dma.done.wait [#allocation5], 2048  }
 0x24c   :  { %746 = vsyncadd [#allocation5], 4294965248 }
 0x24d   :  { %498 = vsyncpa [#allocation4], 1 }
 0x24e   :  { %499 = vsyncpa [#allocation7], 1 }
 0x24f   :  { %500 = vsyncpa [#allocation5], 1 }

</bundles_post_ra>
